<compile_context>
chip_gen: v7x
topology: tpu7x:2x2x1
jax: 0.10.0
libtpu: 0.0.40
codegen_flags: <defaults>
</compile_context>

<pallas_src>
from functools import partial

import jax
import jax.numpy as jnp
from jax import lax
from jax.experimental import pallas as pl
from jax.experimental.pallas import tpu as pltpu

HIDDEN = 128          # hidden width of ActorNN (== lane width, required by packing)
LANE = 128
SUBLANE = 8
BN_EPS = 1e-5


def _round_up(n, m):
    return ((n + m - 1) // m) * m


def pack_actor_params(params, input_size, hidden=HIDDEN):
    """Pack 14 parameter arrays into 2 DMA-friendly slabs.

    params = [w1, b1, g1, be1, w2, b2, g2, be2, w3, b3, g3, be3, wf, bf]
    with weights already transposed to (in_features, out_features).

    Returns (w_slab, v_slab, in_pad).
    """
    (w1, b1, g1, be1, w2, b2, g2, be2, w3, b3, g3, be3, wf, bf) = params
    assert hidden == LANE, "packing assumes hidden width == 128 lanes"
    out_size = wf.shape[1]
    assert out_size <= LANE, "output padding assumes out_size <= 128"

    in_pad = _round_up(input_size, SUBLANE)
    w1p = jnp.pad(w1, ((0, in_pad - input_size), (0, 0)))
    wfp = jnp.pad(wf, ((0, 0), (0, LANE - out_size)))
    w_slab = jnp.concatenate([w1p, w2, w3, wfp], axis=0)          # (in_pad+384, 128)

    bfp = jnp.pad(bf, ((0, 0), (0, LANE - out_size)))
    v_slab = jnp.concatenate(
        [b1, g1, be1, b2, g2, be2, b3, g3, be3, bfp,
         jnp.zeros((6, LANE), jnp.float32)],
        axis=0,
    )                                                             # (16, 128)
    return w_slab, v_slab, in_pad


@partial(jax.jit, static_argnames=("out_size", "in_pad"))
def actor_forward(x, w_slab, v_slab, *, out_size, in_pad):
    """Run the whole ActorNN forward as one Pallas kernel invocation."""
    B, in_dim = x.shape
    B_pad = _round_up(B, SUBLANE)
    need_row_mask = B_pad != B                                    # static (trace-time)
    inv_b = 1.0 / float(B)                                        # static scalar

    pad_rows = B_pad - B
    pad_cols = in_pad - in_dim
    if pad_rows or pad_cols:
        x = jnp.pad(x, ((0, pad_rows), (0, pad_cols)))            # zero rows/cols

    def kernel(x_ref, w_ref, v_ref, o_ref):
        xv = x_ref[...]                       # (B_pad, in_pad) f32
        vecs = v_ref[...]                     # (16, 128) f32 — load once, slice locals
        b1, g1, be1 = vecs[0:1], vecs[1:2], vecs[2:3]
        b2, g2, be2 = vecs[3:4], vecs[4:5], vecs[5:6]
        b3, g3, be3 = vecs[6:7], vecs[7:8], vecs[8:9]
        bf = vecs[9:10]

        if need_row_mask:
            # Padded rows go through relu(0 @ W + b) != 0 -> exclude from stats.
            row_ids = lax.broadcasted_iota(jnp.int32, (B_pad, 1), 0)
            valid = (row_ids < B).astype(jnp.float32)             # (B_pad, 1)
        else:
            valid = None

        def hidden_layer(h_in, row_off, k, b, g, be):
            # Linear (bf16 MXU, f32 accumulate) + bias + ReLU
            w = w_ref[pl.ds(row_off, k), :].astype(jnp.bfloat16)
            h = jnp.dot(h_in.astype(jnp.bfloat16), w,
                        preferred_element_type=jnp.float32) + b
            h = jnp.maximum(h, 0.0)
            # BatchNorm1d (training mode): one-pass stats over the TRUE batch,
            # folded into a single per-feature scale/shift (f32).
            hm = h * valid if need_row_mask else h
            s1 = jnp.sum(hm, axis=0, keepdims=True)
            s2 = jnp.sum(hm * hm, axis=0, keepdims=True)
            mean = s1 * inv_b
            var = jnp.maximum(s2 * inv_b - mean * mean, 0.0)
            scale = lax.rsqrt(var + BN_EPS) * g
            shift = be - mean * scale
            return h * scale + shift

        h = hidden_layer(xv, 0, in_pad, b1, g1, be1)
        h = hidden_layer(h, in_pad, HIDDEN, b2, g2, be2)
        h = hidden_layer(h, in_pad + HIDDEN, HIDDEN, b3, g3, be3)

        # Final layer + tanh in f32 (weights tiny: U(-0.003, 0.003))
        wf = w_ref[pl.ds(in_pad + 2 * HIDDEN, HIDDEN), :]
        o_ref[...] = jnp.tanh(
            jnp.dot(h, wf, preferred_element_type=jnp.float32) + bf
        ).astype(o_ref.dtype)

    vmem = pl.BlockSpec(memory_space=pltpu.MemorySpace.VMEM)
    flops = 2 * B_pad * (in_pad * HIDDEN + 2 * HIDDEN * HIDDEN + HIDDEN * LANE)
    transcendentals = 3 * HIDDEN + B_pad * LANE                   # rsqrt + tanh
    bytes_accessed = 4 * (x.size + w_slab.size + v_slab.size + B_pad * LANE)

    out_full = pl.pallas_call(
        kernel,
        out_shape=jax.ShapeDtypeStruct((B_pad, LANE), jnp.float32),  # lane-dense
        in_specs=[vmem, vmem, vmem],
        out_specs=vmem,
        cost_estimate=pl.CostEstimate(
            flops=flops,
            transcendentals=transcendentals,
            bytes_accessed=bytes_accessed,
        ),
    )(x, w_slab, v_slab)
    return out_full[:B, :out_size]


def init_actor_params(key, input_size, output_size, hidden=HIDDEN):
    """Deterministic init mirroring ActorNN.init_params():
       hidden weights ~ U(-sqrt(1/out_features), +sqrt(1/out_features)),
       final weight ~ U(-0.003, 0.003), biases ~ U(-1/sqrt(fan_in), +1/sqrt(fan_in)),
       BN gamma=1, beta=0.  Weights returned pre-transposed as (in, out)."""
    keys = jax.random.split(key, 8)
    params = []
    in_dims = [input_size, hidden, hidden]
    for i, in_dim in enumerate(in_dims):
        lim_w = jnp.sqrt(1.0 / hidden)            # weight.size()[0] == out_features
        lim_b = 1.0 / jnp.sqrt(jnp.float32(in_dim))
        w = jax.random.uniform(keys[2 * i], (in_dim, hidden), jnp.float32,
                               minval=-lim_w, maxval=lim_w)
        b = jax.random.uniform(keys[2 * i + 1], (1, hidden), jnp.float32,
                               minval=-lim_b, maxval=lim_b)
        g = jnp.ones((1, hidden), jnp.float32)
        be = jnp.zeros((1, hidden), jnp.float32)
        params += [w, b, g, be]
    lim_bf = 1.0 / jnp.sqrt(jnp.float32(hidden))
    wf = jax.random.uniform(keys[6], (hidden, output_size), jnp.float32,
                            minval=-0.003, maxval=0.003)
    bf = jax.random.uniform(keys[7], (1, output_size), jnp.float32,
                            minval=-lim_bf, maxval=lim_bf)
    params += [wf, bf]
    return params


def actor_reference(x, params):
    """Pure-JAX (f32, two-pass BN) reference for correctness checking."""
    (w1, b1, g1, be1, w2, b2, g2, be2, w3, b3, g3, be3, wf, bf) = params

    def bn(h, g, be):
        m = jnp.mean(h, axis=0, keepdims=True)
        v = jnp.mean((h - m) ** 2, axis=0, keepdims=True)
        return (h - m) / jnp.sqrt(v + BN_EPS) * g + be

    h = bn(jnp.maximum(x @ w1 + b1, 0.0), g1, be1)
    h = bn(jnp.maximum(h @ w2 + b2, 0.0), g2, be2)
    h = bn(jnp.maximum(h @ w3 + b3, 0.0), g3, be3)
    return jnp.tanh(h @ wf + bf)


if __name__ == "__main__":
    B, INPUT_SIZE, OUTPUT_SIZE = 8, 32, 4
    key = jax.random.PRNGKey(0)
    k_x, k_p = jax.random.split(key)
    x = jax.random.normal(k_x, (B, INPUT_SIZE), jnp.float32)
    params = init_actor_params(k_p, INPUT_SIZE, OUTPUT_SIZE)

    # Pack parameters once (amortized outside the forward call).
    w_slab, v_slab, in_pad = pack_actor_params(params, INPUT_SIZE)

    out = actor_forward(x, w_slab, v_slab, out_size=OUTPUT_SIZE, in_pad=in_pad)
    out = jax.block_until_ready(out)

    ref = actor_reference(x, params)
    assert out.shape == (B, OUTPUT_SIZE)
    # bf16 hidden-layer GEMMs -> relaxed tolerance vs. pure-f32 reference.
    assert jnp.allclose(out, ref, atol=2e-2, rtol=0.0), "kernel mismatch vs reference"

    # Also exercise the non-multiple-of-8 batch path (masked BN statistics).
    B2 = 5
    x2 = jax.random.normal(jax.random.PRNGKey(1), (B2, INPUT_SIZE), jnp.float32)
    out2 = jax.block_until_ready(
        actor_forward(x2, w_slab, v_slab, out_size=OUTPUT_SIZE, in_pad=in_pad))
    ref2 = actor_reference(x2, params)
    assert out2.shape == (B2, OUTPUT_SIZE)
    assert jnp.allclose(out2, ref2, atol=2e-2, rtol=0.0), "padded-batch mismatch"

    print("KERNEL_OK")
</pallas_src>

<mosaic_0001>
module attributes {stable_mosaic.version = 11 : i64} {
  func.func @kernel(%arg0: memref<8x32xf32, #tpu.memory_space<vmem>>, %arg1: memref<416x128xf32, #tpu.memory_space<vmem>>, %arg2: memref<16x128xf32, #tpu.memory_space<vmem>>, %arg3: memref<8x128xf32, #tpu.memory_space<vmem>>) attributes {dimension_semantics = [], scalar_prefetch = 0 : i64, scratch_operands = 0 : i64, tpu.core_type = #tpu.core_type<tc>} {
    %c0 = arith.constant 0 : index
    %c0_0 = arith.constant 0 : index
    %0 = vector.load %arg0[%c0, %c0_0] : memref<8x32xf32, #tpu.memory_space<vmem>>, vector<8x32xf32>
    %c0_1 = arith.constant 0 : index
    %c0_2 = arith.constant 0 : index
    %1 = vector.load %arg2[%c0_1, %c0_2] : memref<16x128xf32, #tpu.memory_space<vmem>>, vector<16x128xf32>
    %2 = vector.extract_strided_slice %1 {offsets = [0, 0], sizes = [1, 128], strides = [1, 1]} : vector<16x128xf32> to vector<1x128xf32>
    %3 = vector.extract_strided_slice %1 {offsets = [1, 0], sizes = [1, 128], strides = [1, 1]} : vector<16x128xf32> to vector<1x128xf32>
    %4 = vector.extract_strided_slice %1 {offsets = [2, 0], sizes = [1, 128], strides = [1, 1]} : vector<16x128xf32> to vector<1x128xf32>
    %5 = vector.extract_strided_slice %1 {offsets = [3, 0], sizes = [1, 128], strides = [1, 1]} : vector<16x128xf32> to vector<1x128xf32>
    %6 = vector.extract_strided_slice %1 {offsets = [4, 0], sizes = [1, 128], strides = [1, 1]} : vector<16x128xf32> to vector<1x128xf32>
    %7 = vector.extract_strided_slice %1 {offsets = [5, 0], sizes = [1, 128], strides = [1, 1]} : vector<16x128xf32> to vector<1x128xf32>
    %8 = vector.extract_strided_slice %1 {offsets = [6, 0], sizes = [1, 128], strides = [1, 1]} : vector<16x128xf32> to vector<1x128xf32>
    %9 = vector.extract_strided_slice %1 {offsets = [7, 0], sizes = [1, 128], strides = [1, 1]} : vector<16x128xf32> to vector<1x128xf32>
    %10 = vector.extract_strided_slice %1 {offsets = [8, 0], sizes = [1, 128], strides = [1, 1]} : vector<16x128xf32> to vector<1x128xf32>
    %11 = vector.extract_strided_slice %1 {offsets = [9, 0], sizes = [1, 128], strides = [1, 1]} : vector<16x128xf32> to vector<1x128xf32>
    %c0_3 = arith.constant 0 : index
    %c0_4 = arith.constant 0 : index
    %12 = vector.load %arg1[%c0_3, %c0_4] : memref<416x128xf32, #tpu.memory_space<vmem>>, vector<32x128xf32>
    %13 = arith.truncf %12 : vector<32x128xf32> to vector<32x128xbf16>
    %14 = arith.truncf %0 : vector<8x32xf32> to vector<8x32xbf16>
    %cst = arith.constant dense<0.000000e+00> : vector<8x128xf32>
    %15 = tpu.matmul %14, %13, %cst {dimension_numbers = #tpu.dot_dimension_numbers<[1], [0], [0], [1], [0, 0, 1, 1], [], []>} : vector<8x32xbf16>, vector<32x128xbf16>, vector<8x128xf32> -> vector<8x128xf32>
    %16 = vector.broadcast %2 : vector<1x128xf32> to vector<8x128xf32>
    %17 = arith.addf %15, %16 : vector<8x128xf32>
    %cst_5 = arith.constant 0.000000e+00 : f32
    %18 = vector.broadcast %cst_5 : f32 to vector<8x128xf32>
    %19 = arith.maximumf %17, %18 : vector<8x128xf32>
    %cst_6 = arith.constant dense<0.000000e+00> : vector<128xf32>
    %20 = vector.multi_reduction <add>, %19, %cst_6 [0] : vector<8x128xf32> to vector<128xf32>
    %21 = vector.shape_cast %20 : vector<128xf32> to vector<1x128xf32>
    %22 = arith.mulf %19, %19 : vector<8x128xf32>
    %cst_7 = arith.constant dense<0.000000e+00> : vector<128xf32>
    %23 = vector.multi_reduction <add>, %22, %cst_7 [0] : vector<8x128xf32> to vector<128xf32>
    %24 = vector.shape_cast %23 : vector<128xf32> to vector<1x128xf32>
    %cst_8 = arith.constant 1.250000e-01 : f32
    %25 = vector.broadcast %cst_8 : f32 to vector<1x128xf32>
    %26 = arith.mulf %21, %25 : vector<1x128xf32>
    %cst_9 = arith.constant 1.250000e-01 : f32
    %27 = vector.broadcast %cst_9 : f32 to vector<1x128xf32>
    %28 = arith.mulf %24, %27 : vector<1x128xf32>
    %29 = arith.mulf %26, %26 : vector<1x128xf32>
    %30 = arith.subf %28, %29 : vector<1x128xf32>
    %cst_10 = arith.constant 0.000000e+00 : f32
    %31 = vector.broadcast %cst_10 : f32 to vector<1x128xf32>
    %32 = arith.maximumf %30, %31 : vector<1x128xf32>
    %cst_11 = arith.constant 9.99999974E-6 : f32
    %33 = vector.broadcast %cst_11 : f32 to vector<1x128xf32>
    %34 = arith.addf %32, %33 : vector<1x128xf32>
    %35 = math.rsqrt %34 : vector<1x128xf32>
    %36 = arith.mulf %35, %3 : vector<1x128xf32>
    %37 = arith.mulf %26, %36 : vector<1x128xf32>
    %38 = arith.subf %4, %37 : vector<1x128xf32>
    %39 = vector.broadcast %36 : vector<1x128xf32> to vector<8x128xf32>
    %40 = arith.mulf %19, %39 : vector<8x128xf32>
    %41 = vector.broadcast %38 : vector<1x128xf32> to vector<8x128xf32>
    %42 = arith.addf %40, %41 : vector<8x128xf32>
    %c32 = arith.constant 32 : index
    %c0_12 = arith.constant 0 : index
    %43 = vector.load %arg1[%c32, %c0_12] : memref<416x128xf32, #tpu.memory_space<vmem>>, vector<128x128xf32>
    %44 = arith.truncf %43 : vector<128x128xf32> to vector<128x128xbf16>
    %45 = arith.truncf %42 : vector<8x128xf32> to vector<8x128xbf16>
    %cst_13 = arith.constant dense<0.000000e+00> : vector<8x128xf32>
    %46 = tpu.matmul %45, %44, %cst_13 {dimension_numbers = #tpu.dot_dimension_numbers<[1], [0], [0], [1], [0, 0, 1, 1], [], []>} : vector<8x128xbf16>, vector<128x128xbf16>, vector<8x128xf32> -> vector<8x128xf32>
    %47 = vector.broadcast %5 : vector<1x128xf32> to vector<8x128xf32>
    %48 = arith.addf %46, %47 : vector<8x128xf32>
    %cst_14 = arith.constant 0.000000e+00 : f32
    %49 = vector.broadcast %cst_14 : f32 to vector<8x128xf32>
    %50 = arith.maximumf %48, %49 : vector<8x128xf32>
    %cst_15 = arith.constant dense<0.000000e+00> : vector<128xf32>
    %51 = vector.multi_reduction <add>, %50, %cst_15 [0] : vector<8x128xf32> to vector<128xf32>
    %52 = vector.shape_cast %51 : vector<128xf32> to vector<1x128xf32>
    %53 = arith.mulf %50, %50 : vector<8x128xf32>
    %cst_16 = arith.constant dense<0.000000e+00> : vector<128xf32>
    %54 = vector.multi_reduction <add>, %53, %cst_16 [0] : vector<8x128xf32> to vector<128xf32>
    %55 = vector.shape_cast %54 : vector<128xf32> to vector<1x128xf32>
    %cst_17 = arith.constant 1.250000e-01 : f32
    %56 = vector.broadcast %cst_17 : f32 to vector<1x128xf32>
    %57 = arith.mulf %52, %56 : vector<1x128xf32>
    %cst_18 = arith.constant 1.250000e-01 : f32
    %58 = vector.broadcast %cst_18 : f32 to vector<1x128xf32>
    %59 = arith.mulf %55, %58 : vector<1x128xf32>
    %60 = arith.mulf %57, %57 : vector<1x128xf32>
    %61 = arith.subf %59, %60 : vector<1x128xf32>
    %cst_19 = arith.constant 0.000000e+00 : f32
    %62 = vector.broadcast %cst_19 : f32 to vector<1x128xf32>
    %63 = arith.maximumf %61, %62 : vector<1x128xf32>
    %cst_20 = arith.constant 9.99999974E-6 : f32
    %64 = vector.broadcast %cst_20 : f32 to vector<1x128xf32>
    %65 = arith.addf %63, %64 : vector<1x128xf32>
    %66 = math.rsqrt %65 : vector<1x128xf32>
    %67 = arith.mulf %66, %6 : vector<1x128xf32>
    %68 = arith.mulf %57, %67 : vector<1x128xf32>
    %69 = arith.subf %7, %68 : vector<1x128xf32>
    %70 = vector.broadcast %67 : vector<1x128xf32> to vector<8x128xf32>
    %71 = arith.mulf %50, %70 : vector<8x128xf32>
    %72 = vector.broadcast %69 : vector<1x128xf32> to vector<8x128xf32>
    %73 = arith.addf %71, %72 : vector<8x128xf32>
    %c160 = arith.constant 160 : index
    %c0_21 = arith.constant 0 : index
    %74 = vector.load %arg1[%c160, %c0_21] : memref<416x128xf32, #tpu.memory_space<vmem>>, vector<128x128xf32>
    %75 = arith.truncf %74 : vector<128x128xf32> to vector<128x128xbf16>
    %76 = arith.truncf %73 : vector<8x128xf32> to vector<8x128xbf16>
    %cst_22 = arith.constant dense<0.000000e+00> : vector<8x128xf32>
    %77 = tpu.matmul %76, %75, %cst_22 {dimension_numbers = #tpu.dot_dimension_numbers<[1], [0], [0], [1], [0, 0, 1, 1], [], []>} : vector<8x128xbf16>, vector<128x128xbf16>, vector<8x128xf32> -> vector<8x128xf32>
    %78 = vector.broadcast %8 : vector<1x128xf32> to vector<8x128xf32>
    %79 = arith.addf %77, %78 : vector<8x128xf32>
    %cst_23 = arith.constant 0.000000e+00 : f32
    %80 = vector.broadcast %cst_23 : f32 to vector<8x128xf32>
    %81 = arith.maximumf %79, %80 : vector<8x128xf32>
    %cst_24 = arith.constant dense<0.000000e+00> : vector<128xf32>
    %82 = vector.multi_reduction <add>, %81, %cst_24 [0] : vector<8x128xf32> to vector<128xf32>
    %83 = vector.shape_cast %82 : vector<128xf32> to vector<1x128xf32>
    %84 = arith.mulf %81, %81 : vector<8x128xf32>
    %cst_25 = arith.constant dense<0.000000e+00> : vector<128xf32>
    %85 = vector.multi_reduction <add>, %84, %cst_25 [0] : vector<8x128xf32> to vector<128xf32>
    %86 = vector.shape_cast %85 : vector<128xf32> to vector<1x128xf32>
    %cst_26 = arith.constant 1.250000e-01 : f32
    %87 = vector.broadcast %cst_26 : f32 to vector<1x128xf32>
    %88 = arith.mulf %83, %87 : vector<1x128xf32>
    %cst_27 = arith.constant 1.250000e-01 : f32
    %89 = vector.broadcast %cst_27 : f32 to vector<1x128xf32>
    %90 = arith.mulf %86, %89 : vector<1x128xf32>
    %91 = arith.mulf %88, %88 : vector<1x128xf32>
    %92 = arith.subf %90, %91 : vector<1x128xf32>
    %cst_28 = arith.constant 0.000000e+00 : f32
    %93 = vector.broadcast %cst_28 : f32 to vector<1x128xf32>
    %94 = arith.maximumf %92, %93 : vector<1x128xf32>
    %cst_29 = arith.constant 9.99999974E-6 : f32
    %95 = vector.broadcast %cst_29 : f32 to vector<1x128xf32>
    %96 = arith.addf %94, %95 : vector<1x128xf32>
    %97 = math.rsqrt %96 : vector<1x128xf32>
    %98 = arith.mulf %97, %9 : vector<1x128xf32>
    %99 = arith.mulf %88, %98 : vector<1x128xf32>
    %100 = arith.subf %10, %99 : vector<1x128xf32>
    %101 = vector.broadcast %98 : vector<1x128xf32> to vector<8x128xf32>
    %102 = arith.mulf %81, %101 : vector<8x128xf32>
    %103 = vector.broadcast %100 : vector<1x128xf32> to vector<8x128xf32>
    %104 = arith.addf %102, %103 : vector<8x128xf32>
    %c288 = arith.constant 288 : index
    %c0_30 = arith.constant 0 : index
    %105 = vector.load %arg1[%c288, %c0_30] : memref<416x128xf32, #tpu.memory_space<vmem>>, vector<128x128xf32>
    %cst_31 = arith.constant dense<0.000000e+00> : vector<8x128xf32>
    %106 = tpu.matmul %104, %105, %cst_31 {dimension_numbers = #tpu.dot_dimension_numbers<[1], [0], [0], [1], [0, 0, 1, 1], [], []>} : vector<8x128xf32>, vector<128x128xf32>, vector<8x128xf32> -> vector<8x128xf32>
    %107 = vector.broadcast %11 : vector<1x128xf32> to vector<8x128xf32>
    %108 = arith.addf %106, %107 : vector<8x128xf32>
    %109 = math.tanh %108 : vector<8x128xf32>
    %c0_32 = arith.constant 0 : index
    %c0_33 = arith.constant 0 : index
    %110 = vector.load %arg3[%c0_32, %c0_33] : memref<8x128xf32, #tpu.memory_space<vmem>>, vector<8x128xf32>
    tpu.vector_store %arg3[%c0_32, %c0_33], %109 {strides = array<i32>} : memref<8x128xf32, #tpu.memory_space<vmem>>, vector<8x128xf32>,
    return
  }
}

</mosaic_0001>

<bundles_post_ra>
// kernel: actor_forward.1
= control target key start
LH: loop header
LB: loop body
LE: loop exit
PB: predicated region body
PF: predicated region fallthrough
CT: control target
= control target key end

     0   :  { %8 = vsyncpa [#allocation3], 0  ;;  %s818_s0 = inlined_call_operand.hbm [shape: f32[8,32], index: 0, kind: input, shape index: {}]   ;;  %s819_s1 = inlined_call_operand.hbm [shape: f32[416,128], index: 1, kind: input, shape index: {}]   ;;  %s820_s2 = inlined_call_operand.hbm [shape: f32[16,128], index: 2, kind: input, shape index: {}]   ;;  %s821_s3 = inlined_call_operand.vmem [shape: f32[8,128], index: 3, kind: output, shape index: {}]  }
   0x1   :  { %9 = vsyncpa [#allocation5], 0  ;;  %s691_s12 = smov [#allocation4]   ;;  %s621_s16 = scalar_lea.hbm %s819_s1, 6656 }
   0x2   :  { %s25_s13 = sshll.u32 %s691_s12, 4  ;;  %p622_p0 = scmp.ne.s32.totalorder %s819_s1, %s621_s16  ;;  %s26_s13 = int_to_ptr.vmem [resolvable:$true] %s25_s13 }
   0x3   :  { %p625_p1 = scmp.lt.u32.totalorder %s621_s16, %s819_s1 }
   0x5   :  { %p627_p2 = pnand %p625_p1, %p622_p0 }
   0x7   :  { %630 = shalt.err (!%p627_p2)
}
   0x8   :  { %s631_s21 = scalar_lea.vmem %s26_s13, 6656  ;;  %p636_p4 = scmp.lt.s32.totalorder %s26_s13, %s26_s13 }
   0x9   :  { %p632_p3 = scmp.ne.s32.totalorder %s26_s13, %s631_s21  ;;  %p637_p5 = scmp.lt.s32.totalorder %s631_s21, %s631_s21 }
   0xb   :  { %p638_p6 = por %p637_p5, %p636_p4 }
   0xd   :  { %p639_p7 = pnand %p638_p6, %p632_p3 }
   0xf   :  { %642 = shalt.err (!%p639_p7)
}
  0x10   :  { %s692_s22 = smov 128   ;;  %s693_s23 = smov 8  }
  0x11   :  { %31 = dma.hbm_to_vmem [thread:$0]  %s819_s1, 6656, %s26_s13, [#allocation5], %s692_s22, %s692_s22, %s693_s23  }
  0x12   :  { %s694_s26 = smov [#allocation2]   ;;  %s695_s28 = smov [#allocation6]  }
  0x13   :  { %s16_s27 = sshll.u32 %s694_s26, 4  ;;  %s37_s29 = sshll.u32 %s695_s28, 4  ;;  %s17_s27 = int_to_ptr.vmem [resolvable:$true] %s16_s27  ;;  %s38_s29 = int_to_ptr.vmem [resolvable:$true] %s37_s29 }
  0x14   :  { %s643_s5 = scalar_lea.hbm %s818_s0, 128 }
  0x15   :  { %p644_p8 = scmp.ne.s32.totalorder %s818_s0, %s643_s5  ;;  %p647_p9 = scmp.lt.u32.totalorder %s643_s5, %s818_s0 }
  0x17   :  { %p649_p10 = pnand %p647_p9, %p644_p8 }
  0x19   :  { %652 = shalt.err (!%p649_p10)
}
  0x1a   :  { %s653_s1 = scalar_lea.vmem %s17_s27, 128  ;;  %p658_p12 = scmp.lt.s32.totalorder %s17_s27, %s17_s27 }
  0x1b   :  { %p654_p11 = scmp.ne.s32.totalorder %s17_s27, %s653_s1  ;;  %p659_p13 = scmp.lt.s32.totalorder %s653_s1, %s653_s1 }
  0x1d   :  { %p660_p0 = por %p659_p13, %p658_p12 }
  0x1f   :  { %p661_p1 = pnand %p660_p0, %p654_p11 }
  0x21   :  { %664 = shalt.err (!%p661_p1)
}
  0x22   :  { %19 = dma.hbm_to_vmem [thread:$0]  %s818_s0, 128, %s17_s27, [#allocation3]  }
  0x23   :  { %s665_s14 = scalar_lea.hbm %s820_s2, 256 }
  0x24   :  { %p666_p2 = scmp.ne.s32.totalorder %s820_s2, %s665_s14  ;;  %p669_p3 = scmp.lt.u32.totalorder %s665_s14, %s820_s2 }
  0x26   :  { %p671_p4 = pnand %p669_p3, %p666_p2 }
  0x28   :  { %674 = shalt.err (!%p671_p4)
}
  0x29   :  { %s675_s19 = scalar_lea.vmem %s38_s29, 256  ;;  %p680_p6 = scmp.lt.s32.totalorder %s38_s29, %s38_s29 }
  0x2a   :  { %p676_p5 = scmp.ne.s32.totalorder %s38_s29, %s675_s19  ;;  %p681_p7 = scmp.lt.s32.totalorder %s675_s19, %s675_s19 }
  0x2c   :  { %p682_p8 = por %p681_p7, %p680_p6 }
  0x2e   :  { %p683_p9 = pnand %p682_p8, %p676_p5 }
  0x30   :  { %686 = shalt.err (!%p683_p9)
}
  0x31   :  { %43 = dma.hbm_to_vmem [thread:$0]  %s820_s2, 256, %s38_s29, [#allocation5], %s692_s22, %s692_s22, %s693_s23  }
  0x32   :  { %687 = dma.done.wait [#allocation3], 128  }
  0x33   :  { %688 = vsyncadd [#allocation3], 4294967168 }
  0x34   :  { %689 = dma.done.wait [#allocation5], 6912  }
  0x35   :  { %690 = vsyncadd [#allocation5], 4294960384  ;;  %v696_v0 = vmov 0.0   ;;  %vm697_vm0 = vmmov 0   ;;  %v57_v1 = vld [vmem:[#allocation4] sm:$0xff]  ;;  %v58_v2 = vld [vmem:[#allocation4 + $0x8] sm:$0xff]  ;;  %v64_v33 = vlaneseq }
  0x36   :  { %498 = vmatprep.subr.bf16.mxu0 %v696_v0  ;;  %502 = vmatprep.mubr.msk.bf16.mxu0 %vm697_vm0, %v696_v0  ;;  %v59_v3 = vld [vmem:[#allocation4 + $0x10] sm:$0xff]  ;;  %v61_v4 = vpack.c.bf16 %v58_v2, %v57_v1  ;;  %v60_v5 = vld [vmem:[#allocation4 + $0x18] sm:$0xff]  ;;  %vm68_vm1 = vcmask 261120   ;;  %v149_v9 = vld [vmem:[#allocation4 + $0x20] sm:$0xff] }
  0x37   :  { %506 = vmatprep.subr.bf16.mxu1 %v696_v0  ;;  %522 = vmatprep.mubr.msk.bf16.mxu1 %vm697_vm0, %v696_v0  ;;  %v62_v6 = vpack.c.bf16 %v60_v5, %v59_v3  ;;  %v54_v7 = vld [vmem:[#allocation2] sm:$0xff]  ;;  %v150_v10 = vld [vmem:[#allocation4 + $0x28] sm:$0xff]  ;;  %v151_v12 = vld [vmem:[#allocation4 + $0x30] sm:$0xff]  ;;  %v778_v34 = vshrl.u32 %v64_v33, 7 }
  0x38   :  { %499 = vmatpush3.bf16.msra.mxu0 %v61_v4  ;;  %v63_v8 = vpack.c.bf16 %v54_v7, %v54_v7  ;;  %v165_v11 = vpack.c.bf16 %v150_v10, %v149_v9  ;;  %v152_v13 = vld [vmem:[#allocation4 + $0x38] sm:$0xff]  ;;  %v153_v15 = vld [vmem:[#allocation4 + $0x40] sm:$0xff]  ;;  %v154_v16 = vld [vmem:[#allocation4 + $0x48] sm:$0xff] }
  0x39   :  { %500 = vmatprep.subr.bf16.mxu0 %v696_v0  ;;  %v166_v14 = vpack.c.bf16 %v152_v13, %v151_v12  ;;  %v167_v17 = vpack.c.bf16 %v154_v16, %v153_v15  ;;  %v155_v18 = vld [vmem:[#allocation4 + $0x50] sm:$0xff]  ;;  %v156_v19 = vld [vmem:[#allocation4 + $0x58] sm:$0xff]  ;;  %v157_v21 = vld [vmem:[#allocation4 + $0x60] sm:$0xff]  ;;  %v66_v35 = vsub.s32 0, %v778_v34  ;;  %v141_v2 = vsub.s32 1, %v778_v34 }
  0x3a   :  { %507 = vmatpush3.bf16.msra.mxu1 %v165_v11  ;;  %v168_v20 = vpack.c.bf16 %v156_v19, %v155_v18  ;;  %v158_v22 = vld [vmem:[#allocation4 + $0x68] sm:$0xff]  ;;  %v159_v24 = vld [vmem:[#allocation4 + $0x70] sm:$0xff]  ;;  %v160_v25 = vld [vmem:[#allocation4 + $0x78] sm:$0xff] }
  0x3b   :  { %508 = vmatprep.subr.bf16.mxu1 %v696_v0  ;;  %v169_v23 = vpack.c.bf16 %v158_v22, %v157_v21  ;;  %v170_v26 = vpack.c.bf16 %v160_v25, %v159_v24  ;;  %v161_v27 = vld [vmem:[#allocation4 + $0x80] sm:$0xff]  ;;  %v162_v28 = vld [vmem:[#allocation4 + $0x88] sm:$0xff]  ;;  %v163_v30 = vld [vmem:[#allocation4 + $0x90] sm:$0xff] }
  0x3c   :  { %501 = vmatpush3.bf16.msra.mxu0 %v62_v6  ;;  %v171_v29 = vpack.c.bf16 %v162_v28, %v161_v27  ;;  %v164_v31 = vld [vmem:[#allocation4 + $0x98] sm:$0xff]  ;;  %v781_v36 = vld [vmem:[#allocation6] sm:$0xff]  ;;  %v146_v6 = vsub.s32 2, %v778_v34  ;;  %v256_v13 = vld [vmem:[#allocation4 + $0xa8] sm:$0xff] }
  0x3d   :  { %526 = vmatprep.subr.bf16.mxu0 %v696_v0  ;;  %v172_v32 = vpack.c.bf16 %v164_v31, %v163_v30  ;;  %v67_v37 = vrot.slane %v781_v36, %v66_v35  ;;  %v255_v12 = vld [vmem:[#allocation4 + $0xa0] sm:$0xff]  ;;  %v257_v15 = vld [vmem:[#allocation4 + $0xb0] sm:$0xff]  ;;  %v258_v16 = vld [vmem:[#allocation4 + $0xb8] sm:$0xff] }
  0x3e   :  { %509 = vmatpush3.bf16.msra.mxu1 %v166_v14  ;;  %v271_v14 = vpack.c.bf16 %v256_v13, %v255_v12  ;;  %v259_v18 = vld [vmem:[#allocation4 + $0xc0] sm:$0xff]  ;;  %v260_v19 = vld [vmem:[#allocation4 + $0xc8] sm:$0xff]  ;;  %v261_v21 = vld [vmem:[#allocation4 + $0xd0] sm:$0xff] }
  0x3f   :  { %503 = vmatmul.mubr.msk.bf16.vlgmr.msra.gmra.mrb[0].mxu0 %vm68_vm1, %v63_v8  ;;  %510 = vmatprep.subr.bf16.mxu1 %v696_v0  ;;  %v262_v22 = vld [vmem:[#allocation4 + $0xd8] sm:$0xff]  ;;  %v263_v24 = vld [vmem:[#allocation4 + $0xe0] sm:$0xff]  ;;  %v264_v25 = vld [vmem:[#allocation4 + $0xe8] sm:$0xff] }
  0x40   :  { %542 = vmatprep.mubr.msk.bf16.mxu0 %vm697_vm0, %v696_v0  ;;  %527 = vmatpush3.bf16.msra.mxu0 %v271_v14  ;;  %v265_v27 = vld [vmem:[#allocation4 + $0xf0] sm:$0xff]  ;;  %v266_v28 = vld [vmem:[#allocation4 + $0xf8] sm:$0xff]  ;;  %v267_v30 = vld [vmem:[#allocation4 + $0x100] sm:$0xff] }
  0x41   :  { %528 = vmatprep.subr.bf16.mxu0 %v696_v0  ;;  %v268_v31 = vld [vmem:[#allocation4 + $0x108] sm:$0xff] }
  0x42   :  { %511 = vmatpush3.bf16.msra.mxu1 %v167_v17  ;;  %v272_v17 = vpack.c.bf16 %v258_v16, %v257_v15  ;;  %v277_v33 = vpack.c.bf16 %v268_v31, %v267_v30  ;;  %v361_v15 = vld [vmem:[#allocation4 + $0x120] sm:$0xff]  ;;  %v362_v16 = vld [vmem:[#allocation4 + $0x128] sm:$0xff]  ;;  %v371_v31 = vld [vmem:[#allocation4 + $0x170] sm:$0xff] }
  0x43   :  { %512 = vmatprep.subr.bf16.mxu1 %v696_v0 }
  0x44   :  { %529 = vmatpush3.bf16.msra.mxu0 %v272_v17  ;;  %v582_v17 = vpack.c.bf16 %v362_v16, %v361_v15 }
  0x45   :  { %530 = vmatprep.subr.bf16.mxu0 %v696_v0 }
  0x46   :  { %513 = vmatpush3.bf16.msra.mxu1 %v168_v20  ;;  %v273_v20 = vpack.c.bf16 %v260_v19, %v259_v18  ;;  %v698_v18 = vmov 0.0|0.0   ;;  %v363_v19 = vld [vmem:[#allocation4 + $0x130] sm:$0xff] }
  0x47   :  { %514 = vmatprep.subr.bf16.mxu1 %v696_v0 }
  0x48   :  { %531 = vmatpush3.bf16.msra.mxu0 %v273_v20  ;;  %v364_v20 = vld [vmem:[#allocation4 + $0x138] sm:$0xff] }
  0x49   :  { %532 = vmatprep.subr.bf16.mxu0 %v696_v0 }
  0x4a   :  { %515 = vmatpush3.bf16.msra.mxu1 %v169_v23  ;;  %v274_v23 = vpack.c.bf16 %v262_v22, %v261_v21  ;;  %v585_v21 = vpack.c.bf16 %v364_v20, %v363_v19  ;;  %v365_v22 = vld [vmem:[#allocation4 + $0x140] sm:$0xff] }
  0x4b   :  { %516 = vmatprep.subr.bf16.mxu1 %v696_v0 }
  0x4c   :  { %533 = vmatpush3.bf16.msra.mxu0 %v274_v23  ;;  %v366_v23 = vld [vmem:[#allocation4 + $0x148] sm:$0xff] }
  0x4d   :  { %534 = vmatprep.subr.bf16.mxu0 %v696_v0 }
  0x4e   :  { %517 = vmatpush3.bf16.msra.mxu1 %v170_v26  ;;  %v275_v26 = vpack.c.bf16 %v264_v25, %v263_v24  ;;  %v588_v24 = vpack.c.bf16 %v366_v23, %v365_v22  ;;  %v367_v25 = vld [vmem:[#allocation4 + $0x150] sm:$0xff] }
  0x4f   :  { %518 = vmatprep.subr.bf16.mxu1 %v696_v0 }
  0x50   :  { %535 = vmatpush3.bf16.msra.mxu0 %v275_v26  ;;  %v368_v26 = vld [vmem:[#allocation4 + $0x158] sm:$0xff] }
  0x51   :  { %536 = vmatprep.subr.bf16.mxu0 %v696_v0 }
  0x52   :  { %519 = vmatpush3.bf16.msra.mxu1 %v171_v29  ;;  %v276_v29 = vpack.c.bf16 %v266_v28, %v265_v27  ;;  %v591_v27 = vpack.c.bf16 %v368_v26, %v367_v25  ;;  %v369_v28 = vld [vmem:[#allocation4 + $0x160] sm:$0xff] }
  0x53   :  { %520 = vmatprep.subr.bf16.mxu1 %v696_v0 }
  0x54   :  { %537 = vmatpush3.bf16.msra.mxu0 %v276_v29  ;;  %v370_v29 = vld [vmem:[#allocation4 + $0x168] sm:$0xff] }
  0x55   :  { %538 = vmatprep.subr.bf16.mxu0 %v696_v0  ;;  %v594_v30 = vpack.c.bf16 %v370_v29, %v369_v28 }
  0x56   :  { %521 = vmatpush3.bf16.msra.mxu1 %v172_v32  ;;  %v269_v32 = vld [vmem:[#allocation4 + $0x110] sm:$0xff] }
  0x57   :  { %581 = vmatprep.subr.bf16.mxu1 %v698_v18 }
  0x58   :  { %539 = vmatpush3.bf16.msra.mxu0 %v277_v33 }
  0x59   :  { %540 = vmatprep.subr.bf16.mxu0 %v696_v0 }
 0x112   :  { %v106_v38 = vpop.f32.mrb[0].mxu0 }
 0x113   :  { %v107_v39 = vadd.f32 %v106_v38, %v67_v37  ;;  %v504_v40 = vpop.f32.mrb[1].mxu0  ;;  %v270_v37 = vld [vmem:[#allocation4 + $0x118] sm:$0xff] }
 0x114   :  { %v109_v41 = vpop.f32.mrb[2].mxu0  ;;  %v278_v38 = vpack.c.bf16 %v270_v37, %v269_v32  ;;  %v372_v32 = vld [vmem:[#allocation4 + $0x178] sm:$0xff]  ;;  %v373_v37 = vld [vmem:[#allocation4 + $0x180] sm:$0xff] }
 0x115   :  { %v112_v42 = vmax.f32 %v107_v39, 0.0  ;;  %v505_v43 = vpop.f32.mrb[3].mxu0  ;;  %v176_v39 = vsub.s32 3, %v778_v34  ;;  %v597_v33 = vpack.c.bf16 %v372_v32, %v371_v31 }
 0x116   :  { %541 = vmatpush3.bf16.msra.mxu0 %v278_v38  ;;  %v374_v38 = vld [vmem:[#allocation4 + $0x188] sm:$0xff] }
 0x117   :  { %v113_v44 = vrot.slane %v112_v42, 4  ;;  %v119_v45 = vmul.f32 %v112_v42, %v112_v42  ;;  %v177_v40 = vrot.slane %v781_v36, %v176_v39  ;;  %v600_v39 = vpack.c.bf16 %v374_v38, %v373_v37 }
 0x119   :  { %v114_v46 = vadd.f32 %v113_v44, %v112_v42  ;;  %v120_v47 = vrot.slane %v119_v45, 4 }
 0x11b   :  { %v115_v48 = vrot.slane %v114_v46, 2  ;;  %v121_v49 = vadd.f32 %v120_v47, %v119_v45 }
 0x11d   :  { %v116_v50 = vadd.f32 %v115_v48, %v114_v46  ;;  %v122_v51 = vrot.slane %v121_v49, 2 }
 0x11f   :  { %v117_v52 = vrot.slane %v116_v50, 1  ;;  %v123_v53 = vadd.f32 %v122_v51, %v121_v49 }
 0x121   :  { %v118_v54 = vadd.f32 %v117_v52, %v116_v50  ;;  %v124_v55 = vrot.slane %v123_v53, 1 }
 0x123   :  { %v125_v56 = vadd.f32 %v124_v55, %v123_v53  ;;  %v126_v57 = vmul.f32 0.125, %v118_v54 }
 0x125   :  { %v127_v58 = vmul.f32 0.125, %v125_v56  ;;  %v128_v59 = vmul.f32 %v126_v57, %v126_v57 }
 0x127   :  { %v129_v60 = vsub.f32 %v127_v58, %v128_v59 }
 0x129   :  { %v130_v61 = vmax.f32 %v129_v60, 0.0 }
 0x12b   :  { %v131_v62 = vadd.f32 1e-05, %v130_v61 }
 0x12d   :  { %613 = vrsqrt.f32 %v131_v62 }
 0x137   :  { %v614_v63 = vpop.eup %613 }
 0x138   :  { %v133_v1 = vmul.f32 %v614_v63, %v781_v36 }
 0x13a   :  { %v134_v3 = vmul.f32 %v133_v1, %v126_v57  ;;  %v142_v5 = vrot.slane %v133_v1, %v141_v2 }
 0x13c   :  { %v136_v4 = vrot.slane %v134_v3, 7  ;;  %v143_v8 = vmul.f32 %v142_v5, %v112_v42  ;;  %v247_v5 = vsub.s32 4, %v778_v34 }
 0x13e   :  { %v138_v7 = vsub.f32 %v781_v36, %v136_v4 }
 0x140   :  { %v147_v9 = vrot.slane %v138_v7, %v146_v6 }
 0x142   :  { %v148_v10 = vadd.f32 %v147_v9, %v143_v8  ;;  %v252_v9 = vsub.s32 5, %v778_v34 }
 0x144   :  { %v173_v11 = vpack.c.bf16 %v148_v10, %v148_v10 }
 0x146   :  { %523 = vmatmul.mubr.bf16.vlgmr.msra.gmra.mrb[0].mxu1 %v173_v11 }
 0x147   :  { %578 = vmatprep.mubr.msk.f32.mxu1 %vm697_vm0, %v696_v0  ;;  %583 = vmatpush3.bf16.msra.mxu1 %v582_v17 }
 0x148   :  { %584 = vmatprep.subr.bf16.mxu1 %v698_v18 }
 0x14b   :  { %586 = vmatpush3.bf16.msra.mxu1 %v585_v21 }
 0x14c   :  { %587 = vmatprep.subr.bf16.mxu1 %v698_v18 }
 0x14f   :  { %589 = vmatpush3.bf16.msra.mxu1 %v588_v24 }
 0x150   :  { %590 = vmatprep.subr.bf16.mxu1 %v698_v18 }
 0x153   :  { %592 = vmatpush3.bf16.msra.mxu1 %v591_v27 }
 0x154   :  { %593 = vmatprep.subr.bf16.mxu1 %v698_v18 }
 0x157   :  { %595 = vmatpush3.bf16.msra.mxu1 %v594_v30 }
 0x158   :  { %596 = vmatprep.subr.bf16.mxu1 %v698_v18 }
 0x15b   :  { %598 = vmatpush3.bf16.msra.mxu1 %v597_v33 }
 0x15c   :  { %599 = vmatprep.subr.bf16.mxu1 %v698_v18 }
 0x15f   :  { %601 = vmatpush3.bf16.msra.mxu1 %v600_v39 }
 0x160   :  { %602 = vmatprep.subr.bf16.mxu1 %v698_v18 }
 0x219   :  { %v212_v41 = vpop.f32.mrb[0].mxu1 }
 0x21a   :  { %v213_v42 = vadd.f32 %v212_v41, %v177_v40  ;;  %v524_v43 = vpop.f32.mrb[1].mxu1  ;;  %v375_v40 = vld [vmem:[#allocation4 + $0x190] sm:$0xff]  ;;  %v376_v41 = vld [vmem:[#allocation4 + $0x198] sm:$0xff] }
 0x21b   :  { %v215_v44 = vpop.f32.mrb[2].mxu1  ;;  %v282_v43 = vsub.s32 6, %v778_v34 }
 0x21c   :  { %v218_v45 = vmax.f32 %v213_v42, 0.0  ;;  %v525_v46 = vpop.f32.mrb[3].mxu1  ;;  %v603_v42 = vpack.c.bf16 %v376_v41, %v375_v40 }
 0x21d   :  { %v283_v44 = vrot.slane %v781_v36, %v282_v43 }
 0x21e   :  { %v219_v47 = vrot.slane %v218_v45, 4  ;;  %v225_v48 = vmul.f32 %v218_v45, %v218_v45  ;;  %604 = vmatpush3.bf16.msra.mxu1 %v603_v42 }
 0x220   :  { %v220_v49 = vadd.f32 %v219_v47, %v218_v45  ;;  %v226_v50 = vrot.slane %v225_v48, 4 }
 0x222   :  { %v221_v51 = vrot.slane %v220_v49, 2  ;;  %v227_v52 = vadd.f32 %v226_v50, %v225_v48 }
 0x224   :  { %v222_v53 = vadd.f32 %v221_v51, %v220_v49  ;;  %v228_v54 = vrot.slane %v227_v52, 2 }
 0x226   :  { %v223_v0 = vrot.slane %v222_v53, 1  ;;  %v229_v55 = vadd.f32 %v228_v54, %v227_v52 }
 0x228   :  { %v224_v56 = vadd.f32 %v223_v0, %v222_v53  ;;  %v230_v57 = vrot.slane %v229_v55, 1 }
 0x22a   :  { %v231_v58 = vadd.f32 %v230_v57, %v229_v55  ;;  %v232_v59 = vmul.f32 0.125, %v224_v56 }
 0x22c   :  { %v233_v60 = vmul.f32 0.125, %v231_v58  ;;  %v234_v61 = vmul.f32 %v232_v59, %v232_v59 }
 0x22e   :  { %v235_v62 = vsub.f32 %v233_v60, %v234_v61 }
 0x230   :  { %v236_v63 = vmax.f32 %v235_v62, 0.0 }
 0x232   :  { %v237_v1 = vadd.f32 1e-05, %v236_v63 }
 0x234   :  { %615 = vrsqrt.f32 %v237_v1 }
 0x23e   :  { %v616_v3 = vpop.eup %615 }
 0x23f   :  { %v239_v4 = vmul.f32 %v616_v3, %v781_v36 }
 0x241   :  { %v240_v6 = vmul.f32 %v239_v4, %v232_v59  ;;  %v248_v7 = vrot.slane %v239_v4, %v247_v5 }
 0x243   :  { %v242_v8 = vrot.slane %v240_v6, 7  ;;  %v249_v11 = vmul.f32 %v248_v7, %v218_v45 }
 0x245   :  { %v244_v10 = vsub.f32 %v781_v36, %v242_v8 }
 0x247   :  { %v253_v12 = vrot.slane %v244_v10, %v252_v9  ;;  %v353_v9 = vsub.s32 7, %v778_v34 }
 0x249   :  { %v254_v13 = vadd.f32 %v253_v12, %v249_v11  ;;  %v56_v11 = vld [vmem:[#allocation6 + $0x8] sm:$0xff] }
 0x24a   :  { %v380_v18 = vrot.slane %v56_v11, %v141_v2 }
 0x24b   :  { %v279_v14 = vpack.c.bf16 %v254_v13, %v254_v13 }
 0x24d   :  { %543 = vmatmul.mubr.bf16.vlgmr.msra.gmra.mrb[4].mxu0 %v279_v14 }
 0x320   :  { %v318_v45 = vpop.f32.mrb[4].mxu0 }
 0x321   :  { %v319_v46 = vadd.f32 %v318_v45, %v283_v44  ;;  %v544_v47 = vpop.f32.mrb[5].mxu0 }
 0x322   :  { %v321_v48 = vpop.f32.mrb[6].mxu0 }
 0x323   :  { %v324_v49 = vmax.f32 %v319_v46, 0.0  ;;  %v545_v50 = vpop.f32.mrb[7].mxu0 }
 0x325   :  { %v325_v51 = vrot.slane %v324_v49, 4  ;;  %v331_v52 = vmul.f32 %v324_v49, %v324_v49 }
 0x327   :  { %v326_v53 = vadd.f32 %v325_v51, %v324_v49  ;;  %v332_v54 = vrot.slane %v331_v52, 4 }
 0x329   :  { %v327_v0 = vrot.slane %v326_v53, 2  ;;  %v333_v55 = vadd.f32 %v332_v54, %v331_v52 }
 0x32b   :  { %v328_v56 = vadd.f32 %v327_v0, %v326_v53  ;;  %v334_v57 = vrot.slane %v333_v55, 2 }
 0x32d   :  { %v329_v58 = vrot.slane %v328_v56, 1  ;;  %v335_v59 = vadd.f32 %v334_v57, %v333_v55 }
 0x32f   :  { %v330_v60 = vadd.f32 %v329_v58, %v328_v56  ;;  %v336_v61 = vrot.slane %v335_v59, 1 }
 0x331   :  { %v337_v62 = vadd.f32 %v336_v61, %v335_v59  ;;  %v338_v63 = vmul.f32 0.125, %v330_v60 }
 0x333   :  { %v339_v1 = vmul.f32 0.125, %v337_v62  ;;  %v340_v3 = vmul.f32 %v338_v63, %v338_v63 }
 0x335   :  { %v341_v4 = vsub.f32 %v339_v1, %v340_v3 }
 0x337   :  { %v342_v5 = vmax.f32 %v341_v4, 0.0 }
 0x339   :  { %v343_v6 = vadd.f32 1e-05, %v342_v5 }
 0x33b   :  { %617 = vrsqrt.f32 %v343_v6 }
 0x345   :  { %v618_v7 = vpop.eup %617 }
 0x346   :  { %v345_v8 = vmul.f32 %v618_v7, %v781_v36 }
 0x348   :  { %v346_v10 = vmul.f32 %v345_v8, %v338_v63  ;;  %v354_v12 = vrot.slane %v345_v8, %v353_v9 }
 0x34a   :  { %v348_v13 = vrot.slane %v346_v10, 7  ;;  %v355_v15 = vmul.f32 %v354_v12, %v324_v49 }
 0x34c   :  { %v350_v14 = vsub.f32 %v56_v11, %v348_v13 }
 0x34e   :  { %v359_v16 = vrot.slane %v350_v14, %v66_v35 }
 0x350   :  { %v360_v17 = vadd.f32 %v359_v16, %v355_v15 }
 0x352   :  { %579 = vmatmul.mubr.f32.vlgmr.msra.gmra.mrb[4].mxu1 %v360_v17 }
 0x425   :  { %v447_v19 = vpop.f32.mrb[4].mxu1 }
 0x426   :  { %v448_v20 = vadd.f32 %v447_v19, %v380_v18  ;;  %v580_v21 = vpop.f32.mrb[5].mxu1 }
 0x428   :  { %619 = vtanh.f32 %v448_v20 }
 0x432   :  { %v620_v36 = vpop.eup %619 }
 0x433   :  { %452 = vst [vmem:[%s821_s3] sm:$0xff] %v620_v36 }
 0x434   :  { %457 = vsyncpa [#allocation3], 1 }
 0x435   :  { %458 = vsyncpa [#allocation5], 1 }

</bundles_post_ra>
